<compile_context>
chip_gen: v5e
topology: v5e:2x2
jax: 0.10.0
libtpu: 0.0.40
codegen_flags: <defaults>
</compile_context>

<pallas_src>
import functools

import jax
import jax.numpy as jnp
from jax.experimental import pallas as pl
from jax.experimental.pallas import tpu as pltpu


# ----------------------------- in-kernel helpers -----------------------------

def _shift_lanes(x, offset):
    """out[:, i] == x[:, (i + offset) mod n].

    Unambiguous lane rotation built from two lane slices + one concatenate
    (same pattern as in-kernel RoPE).  Lanes that wrap across the image /
    row boundary are zeroed afterwards by the caller's boundary mask.
    """
    n = x.shape[-1]
    s = offset % n
    if s == 0:
        return x
    return jnp.concatenate([x[:, s:], x[:, :s]], axis=1)


# ----------------------------- fused Pallas kernel -----------------------------

def bottleneck_kernel(x_ref, w1_ref, b1_ref, w2_ref, b2_ref, w3_ref, b3_ref,
                      m_ref, qp_ref, o_ref, *, W, b_tile):
    """Whole quantized bottleneck for a tile of b_tile images, entirely in VMEM.

    x_ref  : (b_tile, Cin, HW)  VMEM  input (NCHW with H,W flattened -> lane dim)
    w1_ref : (P, Cin)           VMEM  conv1 1x1 weights (DoReFa-quant, BN1 scale folded)
    b1_ref : (P, 1)             VMEM  folded BN1 bias
    w2_ref : (P, 9P)            VMEM  conv2 3x3 weights, taps concatenated along K (BN2 folded)
    b2_ref : (P, 1)             VMEM  folded BN2 bias
    w3_ref : (4P, P)            VMEM  conv3 1x1 weights (BN3 scale folded)
    b3_ref : (4P, 1)            VMEM  folded BN3 bias
    m_ref  : (9P, HW)           VMEM  {0,1} conv2 boundary mask per tap row-block
    qp_ref : (9,)               SMEM  [alpha, scale, inv_scale] x {act_q1, act_q2, act_q3}
    o_ref  : (b_tile, Cout, HW) VMEM  output
    """
    a1, s1, is1 = qp_ref[0], qp_ref[1], qp_ref[2]
    a2, s2, is2 = qp_ref[3], qp_ref[4], qp_ref[5]
    a3, s3, is3 = qp_ref[6], qp_ref[7], qp_ref[8]

    w1 = w1_ref[...]
    b1 = b1_ref[...]
    w2 = w2_ref[...]
    b2 = b2_ref[...]
    w3 = w3_ref[...]
    b3 = b3_ref[...]
    tap_mask = m_ref[...]                                   # (9P, HW)

    for b in range(b_tile):                                 # static unroll, no per-step overhead
        x = x_ref[b]                                        # (Cin, HW), lane dim = HW

        # act_q1 (PACT): clamp to [0, alpha1], uniform-quantize to 2^a - 1 levels.
        xq = jnp.round(jnp.clip(x, 0.0, a1) * s1) * is1
        # Residual is taken AFTER act_q1 (matches `identity = x` in the module).
        # Stash it in the output block (Cin == Cout) instead of keeping it in vregs.
        o_ref[b] = xq

        # conv1 (1x1) + folded BN1 + ReLU + act_q2.
        h1 = jnp.dot(w1, xq, preferred_element_type=jnp.float32) + b1
        h1 = jnp.round(jnp.minimum(jnp.maximum(h1, 0.0), a2) * s2) * is2   # (P, HW)

        # conv2 (3x3, pad=1, stride=1): build the (9P, HW) im2col tensor with 9
        # lane shifts + one boundary-mask multiply, then ONE K=9P matmul.
        taps = []
        for dy in range(3):
            for dx in range(3):
                taps.append(_shift_lanes(h1, (dy - 1) * W + (dx - 1)))
        col = jnp.concatenate(taps, axis=0) * tap_mask                     # (9P, HW)

        # folded BN2 + ReLU + act_q3.
        h2 = jnp.dot(w2, col, preferred_element_type=jnp.float32) + b2
        h2 = jnp.round(jnp.minimum(jnp.maximum(h2, 0.0), a3) * s3) * is3   # (P, HW)

        # conv3 (1x1) + folded BN3 + identity + ReLU.
        h3 = jnp.dot(w3, h2, preferred_element_type=jnp.float32) + b3      # (4P, HW)
        o_ref[b] = jnp.maximum(h3 + o_ref[b], 0.0).astype(o_ref.dtype)


# ----------------------------- one-time param prep -----------------------------

def dorefa_weight_quant(w, w_bit):
    # TODO(synk): conv2d_Q_fn_dorefa2 / mean_aligned source not provided; using
    # standard DoReFa-W weight quantization as the reference semantics.
    if w_bit == 32:
        return w
    n = float(2 ** w_bit - 1)
    w = jnp.tanh(w)
    w = w / (2.0 * jnp.max(jnp.abs(w))) + 0.5
    return 2.0 * (jnp.round(w * n) / n) - 1.0


def bn_fold(gamma, beta, running_mean, running_var, eps=1e-5):
    s = gamma / jnp.sqrt(running_var + eps)
    b = beta - running_mean * s
    return s, b


def prepare_params(params, w_bit, a_bit):
    """Hoisted out of the forward path: DoReFa weight quantization, inference BN
    folding (scale folded into weight rows), PACT scale precompute.  Weight
    matrices are oriented for W @ X (channels-on-sublanes) matmuls."""
    n_levels = float(2 ** a_bit - 1)

    w1 = dorefa_weight_quant(params["conv1_w"], w_bit)[:, :, 0, 0]    # (P, Cin)
    w2 = dorefa_weight_quant(params["conv2_w"], w_bit)                # (P, P, 3, 3)
    w3 = dorefa_weight_quant(params["conv3_w"], w_bit)[:, :, 0, 0]    # (4P, P)

    s1, b1 = bn_fold(*params["bn1"])
    s2, b2 = bn_fold(*params["bn2"])
    s3, b3 = bn_fold(*params["bn3"])

    w1m = (w1 * s1[:, None]).astype(jnp.float32)                      # (P, Cin)
    w2m = (jnp.concatenate([w2[:, :, dy, dx]                          # (P, 9P), tap t = dy*3+dx
                            for dy in range(3) for dx in range(3)], axis=1)
           * s2[:, None]).astype(jnp.float32)
    w3m = (w3 * s3[:, None]).astype(jnp.float32)                      # (4P, P)

    def qtriple(alpha):
        a = alpha.reshape(())
        s = n_levels / a
        return jnp.stack([a, s, 1.0 / s])

    qp = jnp.concatenate([qtriple(params["q_alpha1"]),
                          qtriple(params["q_alpha2"]),
                          qtriple(params["q_alpha3"])]).astype(jnp.float32)   # (9,)

    return {"w1m": w1m, "b1": b1[:, None].astype(jnp.float32),
            "w2m": w2m, "b2": b2[:, None].astype(jnp.float32),
            "w3m": w3m, "b3": b3[:, None].astype(jnp.float32),
            "qp": qp}


# ----------------------------- wrapper-side helpers -----------------------------

def _tap_masks(H, W, planes):
    """(9*planes, H*W) float {0,1} mask: rows t*P..(t+1)*P correspond to conv2 tap
    t = dy*3+dx and zero out positions whose 3x3 neighbour falls in the padding."""
    h = jnp.arange(H)[:, None]
    w = jnp.arange(W)[None, :]
    rows = []
    for dy in range(3):
        for dx in range(3):
            valid = ((h + dy - 1 >= 0) & (h + dy - 1 < H) &
                     (w + dx - 1 >= 0) & (w + dx - 1 < W))
            rows.append(valid.astype(jnp.float32).reshape(1, H * W))
    m = jnp.concatenate(rows, axis=0)                  # (9, HW)
    return jnp.repeat(m, planes, axis=0)               # (9P, HW)


def _pick_batch_tile(n, hw, cin, cout, planes,
                     target_rows=512, vmem_budget_bytes=6 << 20, max_unroll=8):
    """Images per grid step: aim for >= ~512 spatial rows per step to amortize
    the ~0.35us per-step overhead, but stay well inside the scoped VMEM budget
    (conservative for v7x's 64 MiB physical / 32 MiB scoped) and cap the
    in-kernel unroll."""
    per_image = 4 * hw * (2 * cin + cout + 12 * planes)   # rough live f32 bytes / image / step
    bt = min(n, max_unroll,
             max(1, target_rows // max(hw, 1)),
             max(1, vmem_budget_bytes // max(per_image, 1)))
    bt = max(1, bt)
    while n % bt:
        bt -= 1
    return bt


# ----------------------------- forward wrapper -----------------------------

@jax.jit
def bottleneck_forward(x_nchw, fp):
    N, Cin, H, W = x_nchw.shape
    Cout, planes = fp["w3m"].shape
    assert Cin == Cout, "no-downsample residual requires inplanes == planes*expansion"
    HW = H * W

    # NCHW is already channels-on-sublanes / spatial-on-lanes: only free reshapes,
    # no HBM transpose round trips.
    x = x_nchw.reshape(N, Cin, HW)
    masks = _tap_masks(H, W, planes)                 # constant under jit
    b_tile = _pick_batch_tile(N, HW, Cin, Cout, planes)

    kernel = functools.partial(bottleneck_kernel, W=W, b_tile=b_tile)

    out = pl.pallas_call(
        kernel,
        out_shape=jax.ShapeDtypeStruct((N, Cout, HW), jnp.float32),
        grid=(N // b_tile,),                         # several images per step, pipelined
        in_specs=[
            pl.BlockSpec((b_tile, Cin, HW), lambda n: (n, 0, 0)),
            pl.BlockSpec((planes, Cin), lambda n: (0, 0)),        # weights stay resident
            pl.BlockSpec((planes, 1), lambda n: (0, 0)),
            pl.BlockSpec((planes, 9 * planes), lambda n: (0, 0)),
            pl.BlockSpec((planes, 1), lambda n: (0, 0)),
            pl.BlockSpec((Cout, planes), lambda n: (0, 0)),
            pl.BlockSpec((Cout, 1), lambda n: (0, 0)),
            pl.BlockSpec((9 * planes, HW), lambda n: (0, 0)),     # conv2 boundary mask
            pl.BlockSpec(memory_space=pltpu.MemorySpace.SMEM),    # PACT scalars
        ],
        out_specs=pl.BlockSpec((b_tile, Cout, HW), lambda n: (n, 0, 0)),
        compiler_params=pltpu.CompilerParams(
            dimension_semantics=("parallel",),       # shard batch tiles across TCs
            vmem_limit_bytes=32 * 1024 * 1024,       # explicit scoped-VMEM limit (raises v5e default)
        ),
    )(x, fp["w1m"], fp["b1"], fp["w2m"], fp["b2"], fp["w3m"], fp["b3"], masks, fp["qp"])

    return out.reshape(N, Cout, H, W)


# ----------------------------- param init -----------------------------

def init_params(key, inplanes, planes, q_init=10.0):
    ks = jax.random.split(key, 16)

    def bn_params(k, c):
        k1, k2, k3, k4 = jax.random.split(k, 4)
        gamma = jax.random.uniform(k1, (c,), jnp.float32, 0.5, 1.5)
        beta = 0.1 * jax.random.normal(k2, (c,), jnp.float32)
        mean = 0.1 * jax.random.normal(k3, (c,), jnp.float32)
        var = jax.random.uniform(k4, (c,), jnp.float32, 0.5, 1.5)
        return (gamma, beta, mean, var)

    expansion = 4
    return {
        "conv1_w": 0.1 * jax.random.normal(ks[0], (planes, inplanes, 1, 1), jnp.float32),
        "conv2_w": 0.1 * jax.random.normal(ks[1], (planes, planes, 3, 3), jnp.float32),
        "conv3_w": 0.1 * jax.random.normal(ks[2], (planes * expansion, planes, 1, 1), jnp.float32),
        "bn1": bn_params(ks[3], planes),
        "bn2": bn_params(ks[4], planes),
        "bn3": bn_params(ks[5], planes * expansion),
        "q_alpha1": jnp.full((1, 1), q_init, jnp.float32),
        "q_alpha2": jnp.full((1, 1), q_init, jnp.float32),
        "q_alpha3": jnp.full((1, 1), q_init, jnp.float32),
    }


# ----------------------------- main -----------------------------

if __name__ == "__main__":
    key = jax.random.PRNGKey(0)
    k_x, k_p = jax.random.split(key)

    N, inplanes, planes, H, W = 2, 32, 8, 8, 8   # inplanes == planes*4 -> identity residual
    w_bit, a_bit = 4, 4

    x = jax.random.normal(k_x, (N, inplanes, H, W), jnp.float32)
    params = init_params(k_p, inplanes, planes)

    # One-time prep (weights / BN / PACT scales are static at inference).
    fp = prepare_params(params, w_bit, a_bit)

    out = bottleneck_forward(x, fp)
    out = jax.block_until_ready(out)
    result = (out, w_bit, a_bit)   # mirrors the module's (out, w_bit, a_bit) return

    assert out.shape == (N, 4 * planes, H, W)
    assert bool(jnp.all(jnp.isfinite(out)))
    assert bool(jnp.all(out >= 0.0))   # final ReLU
    print("KERNEL_OK")
</pallas_src>

<mosaic_0001>
module attributes {stable_mosaic.version = 11 : i64} {
  func.func @bottleneck_kernel(%arg0: i32, %arg1: memref<2x32x64xf32, #tpu.memory_space<vmem>>, %arg2: memref<8x32xf32, #tpu.memory_space<vmem>>, %arg3: memref<8x1xf32, #tpu.memory_space<vmem>>, %arg4: memref<8x72xf32, #tpu.memory_space<vmem>>, %arg5: memref<8x1xf32, #tpu.memory_space<vmem>>, %arg6: memref<32x8xf32, #tpu.memory_space<vmem>>, %arg7: memref<32x1xf32, #tpu.memory_space<vmem>>, %arg8: memref<72x64xf32, #tpu.memory_space<vmem>>, %arg9: memref<9xf32, #tpu.memory_space<smem>>, %arg10: memref<2x32x64xf32, #tpu.memory_space<vmem>>) attributes {dimension_semantics = [#tpu.dimension_semantics<parallel>], iteration_bounds = array<i64: 1>, scalar_prefetch = 0 : i64, scratch_operands = 0 : i64, tpu.core_type = #tpu.core_type<tc>, window_params = [{transform_indices = @transform_0, window_bounds = array<i64: 2, 32, 64>}, {pipeline_mode = #tpu.pipeline_mode<synchronous>, transform_indices = @transform_1, window_bounds = array<i64: 8, 32>}, {pipeline_mode = #tpu.pipeline_mode<synchronous>, transform_indices = @transform_2, window_bounds = array<i64: 8, 1>}, {pipeline_mode = #tpu.pipeline_mode<synchronous>, transform_indices = @transform_3, window_bounds = array<i64: 8, 72>}, {pipeline_mode = #tpu.pipeline_mode<synchronous>, transform_indices = @transform_4, window_bounds = array<i64: 8, 1>}, {pipeline_mode = #tpu.pipeline_mode<synchronous>, transform_indices = @transform_5, window_bounds = array<i64: 32, 8>}, {pipeline_mode = #tpu.pipeline_mode<synchronous>, transform_indices = @transform_6, window_bounds = array<i64: 32, 1>}, {pipeline_mode = #tpu.pipeline_mode<synchronous>, transform_indices = @transform_7, window_bounds = array<i64: 72, 64>}, {transform_indices = @transform_8, window_bounds = array<i64: 9>}, {transform_indices = @transform_9, window_bounds = array<i64: 2, 32, 64>}]} {
    %c0 = arith.constant 0 : index
    %0 = memref.load %arg9[%c0] : memref<9xf32, #tpu.memory_space<smem>>
    %c1 = arith.constant 1 : index
    %1 = memref.load %arg9[%c1] : memref<9xf32, #tpu.memory_space<smem>>
    %c2 = arith.constant 2 : index
    %2 = memref.load %arg9[%c2] : memref<9xf32, #tpu.memory_space<smem>>
    %c3 = arith.constant 3 : index
    %3 = memref.load %arg9[%c3] : memref<9xf32, #tpu.memory_space<smem>>
    %c4 = arith.constant 4 : index
    %4 = memref.load %arg9[%c4] : memref<9xf32, #tpu.memory_space<smem>>
    %c5 = arith.constant 5 : index
    %5 = memref.load %arg9[%c5] : memref<9xf32, #tpu.memory_space<smem>>
    %c6 = arith.constant 6 : index
    %6 = memref.load %arg9[%c6] : memref<9xf32, #tpu.memory_space<smem>>
    %c7 = arith.constant 7 : index
    %7 = memref.load %arg9[%c7] : memref<9xf32, #tpu.memory_space<smem>>
    %c8 = arith.constant 8 : index
    %8 = memref.load %arg9[%c8] : memref<9xf32, #tpu.memory_space<smem>>
    %c0_0 = arith.constant 0 : index
    %c0_1 = arith.constant 0 : index
    %9 = vector.load %arg2[%c0_0, %c0_1] : memref<8x32xf32, #tpu.memory_space<vmem>>, vector<8x32xf32>
    %c0_2 = arith.constant 0 : index
    %c0_3 = arith.constant 0 : index
    %10 = vector.load %arg3[%c0_2, %c0_3] : memref<8x1xf32, #tpu.memory_space<vmem>>, vector<8x1xf32>
    %c0_4 = arith.constant 0 : index
    %c0_5 = arith.constant 0 : index
    %11 = vector.load %arg4[%c0_4, %c0_5] : memref<8x72xf32, #tpu.memory_space<vmem>>, vector<8x72xf32>
    %c0_6 = arith.constant 0 : index
    %c0_7 = arith.constant 0 : index
    %12 = vector.load %arg5[%c0_6, %c0_7] : memref<8x1xf32, #tpu.memory_space<vmem>>, vector<8x1xf32>
    %c0_8 = arith.constant 0 : index
    %c0_9 = arith.constant 0 : index
    %13 = vector.load %arg6[%c0_8, %c0_9] : memref<32x8xf32, #tpu.memory_space<vmem>>, vector<32x8xf32>
    %c0_10 = arith.constant 0 : index
    %c0_11 = arith.constant 0 : index
    %14 = vector.load %arg7[%c0_10, %c0_11] : memref<32x1xf32, #tpu.memory_space<vmem>>, vector<32x1xf32>
    %c0_12 = arith.constant 0 : index
    %c0_13 = arith.constant 0 : index
    %15 = vector.load %arg8[%c0_12, %c0_13] : memref<72x64xf32, #tpu.memory_space<vmem>>, vector<72x64xf32>
    %c0_14 = arith.constant 0 : index
    %c0_15 = arith.constant 0 : index
    %c0_16 = arith.constant 0 : index
    %16 = vector.load %arg1[%c0_14, %c0_15, %c0_16] : memref<2x32x64xf32, #tpu.memory_space<vmem>>, vector<1x32x64xf32>
    %17 = vector.shape_cast %16 : vector<1x32x64xf32> to vector<32x64xf32>
    %cst = arith.constant 0.000000e+00 : f32
    %18 = vector.broadcast %cst : f32 to vector<32x64xf32>
    %19 = arith.maximumf %18, %17 : vector<32x64xf32>
    %20 = vector.broadcast %0 : f32 to vector<32x64xf32>
    %21 = arith.minimumf %20, %19 : vector<32x64xf32>
    %22 = vector.broadcast %1 : f32 to vector<32x64xf32>
    %23 = arith.mulf %21, %22 : vector<32x64xf32>
    %24 = math.roundeven %23 : vector<32x64xf32>
    %25 = vector.broadcast %2 : f32 to vector<32x64xf32>
    %26 = arith.mulf %24, %25 : vector<32x64xf32>
    %c0_17 = arith.constant 0 : index
    %c0_18 = arith.constant 0 : index
    %c0_19 = arith.constant 0 : index
    %27 = vector.load %arg10[%c0_17, %c0_18, %c0_19] : memref<2x32x64xf32, #tpu.memory_space<vmem>>, vector<1x32x64xf32>
    %28 = vector.shape_cast %27 : vector<1x32x64xf32> to vector<32x64xf32>
    %29 = vector.shape_cast %26 : vector<32x64xf32> to vector<1x32x64xf32>
    tpu.vector_store %arg10[%c0_17, %c0_18, %c0_19], %29 {strides = array<i32>} : memref<2x32x64xf32, #tpu.memory_space<vmem>>, vector<1x32x64xf32>,
    %cst_20 = arith.constant dense<0.000000e+00> : vector<8x64xf32>
    %30 = tpu.matmul %9, %26, %cst_20 {dimension_numbers = #tpu.dot_dimension_numbers<[1], [0], [0], [1], [0, 0, 1, 1], [], []>} : vector<8x32xf32>, vector<32x64xf32>, vector<8x64xf32> -> vector<8x64xf32>
    %31 = vector.broadcast %10 : vector<8x1xf32> to vector<8x64xf32>
    %32 = arith.addf %30, %31 : vector<8x64xf32>
    %cst_21 = arith.constant 0.000000e+00 : f32
    %33 = vector.broadcast %cst_21 : f32 to vector<8x64xf32>
    %34 = arith.maximumf %32, %33 : vector<8x64xf32>
    %35 = vector.broadcast %3 : f32 to vector<8x64xf32>
    %36 = arith.minimumf %34, %35 : vector<8x64xf32>
    %37 = vector.broadcast %4 : f32 to vector<8x64xf32>
    %38 = arith.mulf %36, %37 : vector<8x64xf32>
    %39 = math.roundeven %38 : vector<8x64xf32>
    %40 = vector.broadcast %5 : f32 to vector<8x64xf32>
    %41 = arith.mulf %39, %40 : vector<8x64xf32>
    %42 = vector.extract_strided_slice %41 {offsets = [0, 55], sizes = [8, 9], strides = [1, 1]} : vector<8x64xf32> to vector<8x9xf32>
    %43 = vector.extract_strided_slice %41 {offsets = [0, 0], sizes = [8, 55], strides = [1, 1]} : vector<8x64xf32> to vector<8x55xf32>
    %44 = tpu.concatenate %42, %43 in 1 : vector<8x9xf32>, vector<8x55xf32> -> vector<8x64xf32>
    %45 = vector.extract_strided_slice %41 {offsets = [0, 56], sizes = [8, 8], strides = [1, 1]} : vector<8x64xf32> to vector<8x8xf32>
    %46 = vector.extract_strided_slice %41 {offsets = [0, 0], sizes = [8, 56], strides = [1, 1]} : vector<8x64xf32> to vector<8x56xf32>
    %47 = tpu.concatenate %45, %46 in 1 : vector<8x8xf32>, vector<8x56xf32> -> vector<8x64xf32>
    %48 = vector.extract_strided_slice %41 {offsets = [0, 57], sizes = [8, 7], strides = [1, 1]} : vector<8x64xf32> to vector<8x7xf32>
    %49 = vector.extract_strided_slice %41 {offsets = [0, 0], sizes = [8, 57], strides = [1, 1]} : vector<8x64xf32> to vector<8x57xf32>
    %50 = tpu.concatenate %48, %49 in 1 : vector<8x7xf32>, vector<8x57xf32> -> vector<8x64xf32>
    %51 = vector.extract_strided_slice %41 {offsets = [0, 63], sizes = [8, 1], strides = [1, 1]} : vector<8x64xf32> to vector<8x1xf32>
    %52 = vector.extract_strided_slice %41 {offsets = [0, 0], sizes = [8, 63], strides = [1, 1]} : vector<8x64xf32> to vector<8x63xf32>
    %53 = tpu.concatenate %51, %52 in 1 : vector<8x1xf32>, vector<8x63xf32> -> vector<8x64xf32>
    %54 = vector.extract_strided_slice %41 {offsets = [0, 1], sizes = [8, 63], strides = [1, 1]} : vector<8x64xf32> to vector<8x63xf32>
    %55 = vector.extract_strided_slice %41 {offsets = [0, 0], sizes = [8, 1], strides = [1, 1]} : vector<8x64xf32> to vector<8x1xf32>
    %56 = tpu.concatenate %54, %55 in 1 : vector<8x63xf32>, vector<8x1xf32> -> vector<8x64xf32>
    %57 = vector.extract_strided_slice %41 {offsets = [0, 7], sizes = [8, 57], strides = [1, 1]} : vector<8x64xf32> to vector<8x57xf32>
    %58 = vector.extract_strided_slice %41 {offsets = [0, 0], sizes = [8, 7], strides = [1, 1]} : vector<8x64xf32> to vector<8x7xf32>
    %59 = tpu.concatenate %57, %58 in 1 : vector<8x57xf32>, vector<8x7xf32> -> vector<8x64xf32>
    %60 = vector.extract_strided_slice %41 {offsets = [0, 8], sizes = [8, 56], strides = [1, 1]} : vector<8x64xf32> to vector<8x56xf32>
    %61 = vector.extract_strided_slice %41 {offsets = [0, 0], sizes = [8, 8], strides = [1, 1]} : vector<8x64xf32> to vector<8x8xf32>
    %62 = tpu.concatenate %60, %61 in 1 : vector<8x56xf32>, vector<8x8xf32> -> vector<8x64xf32>
    %63 = vector.extract_strided_slice %41 {offsets = [0, 9], sizes = [8, 55], strides = [1, 1]} : vector<8x64xf32> to vector<8x55xf32>
    %64 = vector.extract_strided_slice %41 {offsets = [0, 0], sizes = [8, 9], strides = [1, 1]} : vector<8x64xf32> to vector<8x9xf32>
    %65 = tpu.concatenate %63, %64 in 1 : vector<8x55xf32>, vector<8x9xf32> -> vector<8x64xf32>
    %66 = tpu.concatenate %44, %47, %50, %53, %41, %56, %59, %62, %65 in 0 : vector<8x64xf32>, vector<8x64xf32>, vector<8x64xf32>, vector<8x64xf32>, vector<8x64xf32>, vector<8x64xf32>, vector<8x64xf32>, vector<8x64xf32>, vector<8x64xf32> -> vector<72x64xf32>
    %67 = arith.mulf %66, %15 : vector<72x64xf32>
    %cst_22 = arith.constant dense<0.000000e+00> : vector<8x64xf32>
    %68 = tpu.matmul %11, %67, %cst_22 {dimension_numbers = #tpu.dot_dimension_numbers<[1], [0], [0], [1], [0, 0, 1, 1], [], []>} : vector<8x72xf32>, vector<72x64xf32>, vector<8x64xf32> -> vector<8x64xf32>
    %69 = vector.broadcast %12 : vector<8x1xf32> to vector<8x64xf32>
    %70 = arith.addf %68, %69 : vector<8x64xf32>
    %cst_23 = arith.constant 0.000000e+00 : f32
    %71 = vector.broadcast %cst_23 : f32 to vector<8x64xf32>
    %72 = arith.maximumf %70, %71 : vector<8x64xf32>
    %73 = vector.broadcast %6 : f32 to vector<8x64xf32>
    %74 = arith.minimumf %72, %73 : vector<8x64xf32>
    %75 = vector.broadcast %7 : f32 to vector<8x64xf32>
    %76 = arith.mulf %74, %75 : vector<8x64xf32>
    %77 = math.roundeven %76 : vector<8x64xf32>
    %78 = vector.broadcast %8 : f32 to vector<8x64xf32>
    %79 = arith.mulf %77, %78 : vector<8x64xf32>
    %cst_24 = arith.constant dense<0.000000e+00> : vector<32x64xf32>
    %80 = tpu.matmul %13, %79, %cst_24 {dimension_numbers = #tpu.dot_dimension_numbers<[1], [0], [0], [1], [0, 0, 1, 1], [], []>} : vector<32x8xf32>, vector<8x64xf32>, vector<32x64xf32> -> vector<32x64xf32>
    %81 = vector.broadcast %14 : vector<32x1xf32> to vector<32x64xf32>
    %82 = arith.addf %80, %81 : vector<32x64xf32>
    %c0_25 = arith.constant 0 : index
    %c0_26 = arith.constant 0 : index
    %c0_27 = arith.constant 0 : index
    %83 = vector.load %arg10[%c0_25, %c0_26, %c0_27] : memref<2x32x64xf32, #tpu.memory_space<vmem>>, vector<1x32x64xf32>
    %84 = vector.shape_cast %83 : vector<1x32x64xf32> to vector<32x64xf32>
    %85 = arith.addf %82, %84 : vector<32x64xf32>
    %cst_28 = arith.constant 0.000000e+00 : f32
    %86 = vector.broadcast %cst_28 : f32 to vector<32x64xf32>
    %87 = arith.maximumf %85, %86 : vector<32x64xf32>
    %c0_29 = arith.constant 0 : index
    %c0_30 = arith.constant 0 : index
    %c0_31 = arith.constant 0 : index
    %88 = vector.load %arg10[%c0_29, %c0_30, %c0_31] : memref<2x32x64xf32, #tpu.memory_space<vmem>>, vector<1x32x64xf32>
    %89 = vector.shape_cast %88 : vector<1x32x64xf32> to vector<32x64xf32>
    %90 = vector.shape_cast %87 : vector<32x64xf32> to vector<1x32x64xf32>
    tpu.vector_store %arg10[%c0_29, %c0_30, %c0_31], %90 {strides = array<i32>} : memref<2x32x64xf32, #tpu.memory_space<vmem>>, vector<1x32x64xf32>,
    %c1_32 = arith.constant 1 : index
    %c0_33 = arith.constant 0 : index
    %c0_34 = arith.constant 0 : index
    %91 = vector.load %arg1[%c1_32, %c0_33, %c0_34] : memref<2x32x64xf32, #tpu.memory_space<vmem>>, vector<1x32x64xf32>
    %92 = vector.shape_cast %91 : vector<1x32x64xf32> to vector<32x64xf32>
    %cst_35 = arith.constant 0.000000e+00 : f32
    %93 = vector.broadcast %cst_35 : f32 to vector<32x64xf32>
    %94 = arith.maximumf %93, %92 : vector<32x64xf32>
    %95 = vector.broadcast %0 : f32 to vector<32x64xf32>
    %96 = arith.minimumf %95, %94 : vector<32x64xf32>
    %97 = vector.broadcast %1 : f32 to vector<32x64xf32>
    %98 = arith.mulf %96, %97 : vector<32x64xf32>
    %99 = math.roundeven %98 : vector<32x64xf32>
    %100 = vector.broadcast %2 : f32 to vector<32x64xf32>
    %101 = arith.mulf %99, %100 : vector<32x64xf32>
    %c1_36 = arith.constant 1 : index
    %c0_37 = arith.constant 0 : index
    %c0_38 = arith.constant 0 : index
    %102 = vector.load %arg10[%c1_36, %c0_37, %c0_38] : memref<2x32x64xf32, #tpu.memory_space<vmem>>, vector<1x32x64xf32>
    %103 = vector.shape_cast %102 : vector<1x32x64xf32> to vector<32x64xf32>
    %104 = vector.shape_cast %101 : vector<32x64xf32> to vector<1x32x64xf32>
    tpu.vector_store %arg10[%c1_36, %c0_37, %c0_38], %104 {strides = array<i32>} : memref<2x32x64xf32, #tpu.memory_space<vmem>>, vector<1x32x64xf32>,
    %cst_39 = arith.constant dense<0.000000e+00> : vector<8x64xf32>
    %105 = tpu.matmul %9, %101, %cst_39 {dimension_numbers = #tpu.dot_dimension_numbers<[1], [0], [0], [1], [0, 0, 1, 1], [], []>} : vector<8x32xf32>, vector<32x64xf32>, vector<8x64xf32> -> vector<8x64xf32>
    %106 = vector.broadcast %10 : vector<8x1xf32> to vector<8x64xf32>
    %107 = arith.addf %105, %106 : vector<8x64xf32>
    %cst_40 = arith.constant 0.000000e+00 : f32
    %108 = vector.broadcast %cst_40 : f32 to vector<8x64xf32>
    %109 = arith.maximumf %107, %108 : vector<8x64xf32>
    %110 = vector.broadcast %3 : f32 to vector<8x64xf32>
    %111 = arith.minimumf %109, %110 : vector<8x64xf32>
    %112 = vector.broadcast %4 : f32 to vector<8x64xf32>
    %113 = arith.mulf %111, %112 : vector<8x64xf32>
    %114 = math.roundeven %113 : vector<8x64xf32>
    %115 = vector.broadcast %5 : f32 to vector<8x64xf32>
    %116 = arith.mulf %114, %115 : vector<8x64xf32>
    %117 = vector.extract_strided_slice %116 {offsets = [0, 55], sizes = [8, 9], strides = [1, 1]} : vector<8x64xf32> to vector<8x9xf32>
    %118 = vector.extract_strided_slice %116 {offsets = [0, 0], sizes = [8, 55], strides = [1, 1]} : vector<8x64xf32> to vector<8x55xf32>
    %119 = tpu.concatenate %117, %118 in 1 : vector<8x9xf32>, vector<8x55xf32> -> vector<8x64xf32>
    %120 = vector.extract_strided_slice %116 {offsets = [0, 56], sizes = [8, 8], strides = [1, 1]} : vector<8x64xf32> to vector<8x8xf32>
    %121 = vector.extract_strided_slice %116 {offsets = [0, 0], sizes = [8, 56], strides = [1, 1]} : vector<8x64xf32> to vector<8x56xf32>
    %122 = tpu.concatenate %120, %121 in 1 : vector<8x8xf32>, vector<8x56xf32> -> vector<8x64xf32>
    %123 = vector.extract_strided_slice %116 {offsets = [0, 57], sizes = [8, 7], strides = [1, 1]} : vector<8x64xf32> to vector<8x7xf32>
    %124 = vector.extract_strided_slice %116 {offsets = [0, 0], sizes = [8, 57], strides = [1, 1]} : vector<8x64xf32> to vector<8x57xf32>
    %125 = tpu.concatenate %123, %124 in 1 : vector<8x7xf32>, vector<8x57xf32> -> vector<8x64xf32>
    %126 = vector.extract_strided_slice %116 {offsets = [0, 63], sizes = [8, 1], strides = [1, 1]} : vector<8x64xf32> to vector<8x1xf32>
    %127 = vector.extract_strided_slice %116 {offsets = [0, 0], sizes = [8, 63], strides = [1, 1]} : vector<8x64xf32> to vector<8x63xf32>
    %128 = tpu.concatenate %126, %127 in 1 : vector<8x1xf32>, vector<8x63xf32> -> vector<8x64xf32>
    %129 = vector.extract_strided_slice %116 {offsets = [0, 1], sizes = [8, 63], strides = [1, 1]} : vector<8x64xf32> to vector<8x63xf32>
    %130 = vector.extract_strided_slice %116 {offsets = [0, 0], sizes = [8, 1], strides = [1, 1]} : vector<8x64xf32> to vector<8x1xf32>
    %131 = tpu.concatenate %129, %130 in 1 : vector<8x63xf32>, vector<8x1xf32> -> vector<8x64xf32>
    %132 = vector.extract_strided_slice %116 {offsets = [0, 7], sizes = [8, 57], strides = [1, 1]} : vector<8x64xf32> to vector<8x57xf32>
    %133 = vector.extract_strided_slice %116 {offsets = [0, 0], sizes = [8, 7], strides = [1, 1]} : vector<8x64xf32> to vector<8x7xf32>
    %134 = tpu.concatenate %132, %133 in 1 : vector<8x57xf32>, vector<8x7xf32> -> vector<8x64xf32>
    %135 = vector.extract_strided_slice %116 {offsets = [0, 8], sizes = [8, 56], strides = [1, 1]} : vector<8x64xf32> to vector<8x56xf32>
    %136 = vector.extract_strided_slice %116 {offsets = [0, 0], sizes = [8, 8], strides = [1, 1]} : vector<8x64xf32> to vector<8x8xf32>
    %137 = tpu.concatenate %135, %136 in 1 : vector<8x56xf32>, vector<8x8xf32> -> vector<8x64xf32>
    %138 = vector.extract_strided_slice %116 {offsets = [0, 9], sizes = [8, 55], strides = [1, 1]} : vector<8x64xf32> to vector<8x55xf32>
    %139 = vector.extract_strided_slice %116 {offsets = [0, 0], sizes = [8, 9], strides = [1, 1]} : vector<8x64xf32> to vector<8x9xf32>
    %140 = tpu.concatenate %138, %139 in 1 : vector<8x55xf32>, vector<8x9xf32> -> vector<8x64xf32>
    %141 = tpu.concatenate %119, %122, %125, %128, %116, %131, %134, %137, %140 in 0 : vector<8x64xf32>, vector<8x64xf32>, vector<8x64xf32>, vector<8x64xf32>, vector<8x64xf32>, vector<8x64xf32>, vector<8x64xf32>, vector<8x64xf32>, vector<8x64xf32> -> vector<72x64xf32>
    %142 = arith.mulf %141, %15 : vector<72x64xf32>
    %cst_41 = arith.constant dense<0.000000e+00> : vector<8x64xf32>
    %143 = tpu.matmul %11, %142, %cst_41 {dimension_numbers = #tpu.dot_dimension_numbers<[1], [0], [0], [1], [0, 0, 1, 1], [], []>} : vector<8x72xf32>, vector<72x64xf32>, vector<8x64xf32> -> vector<8x64xf32>
    %144 = vector.broadcast %12 : vector<8x1xf32> to vector<8x64xf32>
    %145 = arith.addf %143, %144 : vector<8x64xf32>
    %cst_42 = arith.constant 0.000000e+00 : f32
    %146 = vector.broadcast %cst_42 : f32 to vector<8x64xf32>
    %147 = arith.maximumf %145, %146 : vector<8x64xf32>
    %148 = vector.broadcast %6 : f32 to vector<8x64xf32>
    %149 = arith.minimumf %147, %148 : vector<8x64xf32>
    %150 = vector.broadcast %7 : f32 to vector<8x64xf32>
    %151 = arith.mulf %149, %150 : vector<8x64xf32>
    %152 = math.roundeven %151 : vector<8x64xf32>
    %153 = vector.broadcast %8 : f32 to vector<8x64xf32>
    %154 = arith.mulf %152, %153 : vector<8x64xf32>
    %cst_43 = arith.constant dense<0.000000e+00> : vector<32x64xf32>
    %155 = tpu.matmul %13, %154, %cst_43 {dimension_numbers = #tpu.dot_dimension_numbers<[1], [0], [0], [1], [0, 0, 1, 1], [], []>} : vector<32x8xf32>, vector<8x64xf32>, vector<32x64xf32> -> vector<32x64xf32>
    %156 = vector.broadcast %14 : vector<32x1xf32> to vector<32x64xf32>
    %157 = arith.addf %155, %156 : vector<32x64xf32>
    %c1_44 = arith.constant 1 : index
    %c0_45 = arith.constant 0 : index
    %c0_46 = arith.constant 0 : index
    %158 = vector.load %arg10[%c1_44, %c0_45, %c0_46] : memref<2x32x64xf32, #tpu.memory_space<vmem>>, vector<1x32x64xf32>
    %159 = vector.shape_cast %158 : vector<1x32x64xf32> to vector<32x64xf32>
    %160 = arith.addf %157, %159 : vector<32x64xf32>
    %cst_47 = arith.constant 0.000000e+00 : f32
    %161 = vector.broadcast %cst_47 : f32 to vector<32x64xf32>
    %162 = arith.maximumf %160, %161 : vector<32x64xf32>
    %c1_48 = arith.constant 1 : index
    %c0_49 = arith.constant 0 : index
    %c0_50 = arith.constant 0 : index
    %163 = vector.load %arg10[%c1_48, %c0_49, %c0_50] : memref<2x32x64xf32, #tpu.memory_space<vmem>>, vector<1x32x64xf32>
    %164 = vector.shape_cast %163 : vector<1x32x64xf32> to vector<32x64xf32>
    %165 = vector.shape_cast %162 : vector<32x64xf32> to vector<1x32x64xf32>
    tpu.vector_store %arg10[%c1_48, %c0_49, %c0_50], %165 {strides = array<i32>} : memref<2x32x64xf32, #tpu.memory_space<vmem>>, vector<1x32x64xf32>,
    return
  }
  func.func @transform_0(%arg0: i32) -> (i32, i32, i32) {
    %c0_i32 = arith.constant 0 : i32
    %c0_i32_0 = arith.constant 0 : i32
    %c0_i32_1 = arith.constant 0 : i32
    return %arg0, %c0_i32, %c0_i32_0 : i32, i32, i32
  }
  func.func @transform_1(%arg0: i32) -> (i32, i32) {
    %c0_i32 = arith.constant 0 : i32
    %c0_i32_0 = arith.constant 0 : i32
    %c0_i32_1 = arith.constant 0 : i32
    return %c0_i32, %c0_i32_0 : i32, i32
  }
  func.func @transform_2(%arg0: i32) -> (i32, i32) {
    %c0_i32 = arith.constant 0 : i32
    %c0_i32_0 = arith.constant 0 : i32
    %c0_i32_1 = arith.constant 0 : i32
    return %c0_i32, %c0_i32_0 : i32, i32
  }
  func.func @transform_3(%arg0: i32) -> (i32, i32) {
    %c0_i32 = arith.constant 0 : i32
    %c0_i32_0 = arith.constant 0 : i32
    %c0_i32_1 = arith.constant 0 : i32
    return %c0_i32, %c0_i32_0 : i32, i32
  }
  func.func @transform_4(%arg0: i32) -> (i32, i32) {
    %c0_i32 = arith.constant 0 : i32
    %c0_i32_0 = arith.constant 0 : i32
    %c0_i32_1 = arith.constant 0 : i32
    return %c0_i32, %c0_i32_0 : i32, i32
  }
  func.func @transform_5(%arg0: i32) -> (i32, i32) {
    %c0_i32 = arith.constant 0 : i32
    %c0_i32_0 = arith.constant 0 : i32
    %c0_i32_1 = arith.constant 0 : i32
    return %c0_i32, %c0_i32_0 : i32, i32
  }
  func.func @transform_6(%arg0: i32) -> (i32, i32) {
    %c0_i32 = arith.constant 0 : i32
    %c0_i32_0 = arith.constant 0 : i32
    %c0_i32_1 = arith.constant 0 : i32
    return %c0_i32, %c0_i32_0 : i32, i32
  }
  func.func @transform_7(%arg0: i32) -> (i32, i32) {
    %c0_i32 = arith.constant 0 : i32
    %c0_i32_0 = arith.constant 0 : i32
    %c0_i32_1 = arith.constant 0 : i32
    return %c0_i32, %c0_i32_0 : i32, i32
  }
  func.func @transform_8(%arg0: i32) -> i32 {
    %c0_i32 = arith.constant 0 : i32
    %c0_i32_0 = arith.constant 0 : i32
    return %c0_i32 : i32
  }
  func.func @transform_9(%arg0: i32) -> (i32, i32, i32) {
    %c0_i32 = arith.constant 0 : i32
    %c0_i32_0 = arith.constant 0 : i32
    %c0_i32_1 = arith.constant 0 : i32
    return %arg0, %c0_i32, %c0_i32_0 : i32, i32, i32
  }
}

</mosaic_0001>

<bundles_post_ra>
// kernel: bottleneck_forward.1
= control target key start
LH: loop header
LB: loop body
LE: loop exit
PB: predicated region body
PF: predicated region fallthrough
CT: control target
= control target key end

     0   :  { %14 = vsyncpa [#allocation3], 0  ;;  %s695_s12 = smov [#allocation2]   ;;  %s1153_s0 = inlined_call_operand.vmem [shape: f32[2,32,64], index: 0, kind: input, shape index: {}]   ;;  %s1154_s1 = inlined_call_operand.vmem [shape: f32[8,32], index: 1, kind: input, shape index: {}]   ;;  %s1155_s2 = inlined_call_operand.vmem [shape: f32[8,1], index: 2, kind: input, shape index: {}]   ;;  %s1156_s3 = inlined_call_operand.vmem [shape: f32[8,72], index: 3, kind: input, shape index: {}]   ;;  %s1157_s4 = inlined_call_operand.vmem [shape: f32[8,1], index: 4, kind: input, shape index: {}]   ;;  %s1158_s5 = inlined_call_operand.vmem [shape: f32[32,8], index: 5, kind: input, shape index: {}]   ;;  %s1159_s6 = inlined_call_operand.vmem [shape: f32[32,1], index: 6, kind: input, shape index: {}]   ;;  %s1160_s7 = inlined_call_operand.vmem [shape: f32[72,64], index: 7, kind: input, shape index: {}]   ;;  %s1161_s8 = inlined_call_operand.vmem [shape: f32[9], index: 8, kind: input, shape index: {}]   ;;  %s1162_s9 = inlined_call_operand.vmem [shape: f32[2,32,64], index: 9, kind: output, shape index: {}]  }
   0x1   :  { %s36_s11 = sshll.u32 %s1161_s8, 4  ;;  %s37_s11 = int_to_ptr.vmem [resolvable:$true] %s36_s11 }
   0x2   :  { %39 = dma.vmem_to_smem %s37_s11, 16, %s695_s12, [#allocation3]  }
   0x3   :  { %693 = dma.done.wait [#allocation3], 16  }
   0x4   :  { %694 = vsyncadd [#allocation3], 4294967280 }
   0x5   :  { %44 = sfence }
   0x6   :  { %s45_s13 = sld [smem:[#allocation2]]  ;;  %v78_v0 = vld [vmem:[%s1153_s0 + $0x18] sm:$0xff]  ;;  %v77_v1 = vld [vmem:[%s1153_s0 + $0x10] sm:$0xff]  ;;  %v76_v2 = vld [vmem:[%s1153_s0 + $0x8] sm:$0xff]  ;;  %v696_v7 = vmov 0   ;;  %vm102_vm3 = vcmask 523264  }
   0x7   :  { %s528_s8 = sld [smem:[#allocation2 + $0x1]]  ;;  %v75_v3 = vld [vmem:[%s1153_s0] sm:$0xff]  ;;  %v82_v4 = vmax.f32 %v78_v0, 0.0  ;;  %v81_v5 = vmax.f32 %v77_v1, 0.0  ;;  %v80_v6 = vmax.f32 %v76_v2, 0.0  ;;  %678 = vset.pattern.permute.xlu0 %v696_v7  ;;  %679 = vset.pattern.permute.xlu1 %v696_v7  ;;  %vm112_vm5 = vcmask 261120  }
   0x8   :  { %v55_v8 = vld [vmem:[%s1155_s2] sm:$0xff]  ;;  %v79_v9 = vmax.f32 %v75_v3, 0.0  ;;  %680 = vset.pattern.permute.xlu2 %v696_v7  ;;  %s529_s24 = sld [smem:[#allocation2 + $0x2]]  ;;  %s697_s15 = smov 56   ;;  %vm207_vm7 = vcmask 449536   ;;  %vm199_vm8 = vcmask 457728  }
   0x9   :  { %109 = vperm.xlu0 %678, %v55_v8   ;;  %v836_v56 = vld [vmem:[%s1154_s1] sm:$0xff]  ;;  %s842_s14 = sld [smem:[#allocation2 + $0x4]]  ;;  %s698_s16 = smov 55   ;;  %vm191_vm9 = vcmask 465920   ;;  %vm183_vm12 = vcmask 515072   ;;  %vm175_vm15 = vcmask 7168  }
   0xa   :  { %s851_s1 = sld [smem:[#allocation2 + $0x5]]  ;;  %s699_s17 = smov 119  }
   0xb   :  { %s700_s18 = smov 121   ;;  %s701_s19 = smov 120  }
   0xc   :  { %v781_v10 = vstv %s45_s13  ;;  %s840_s13 = sld [smem:[#allocation2 + $0x3]]  ;;  %s703_s20 = smov 63  }
   0xd   :  { %v87_v11 = vmin.f32 %v781_v10, %v82_v4  ;;  %v784_v12 = vstv %s528_s8  ;;  %v86_v13 = vmin.f32 %v781_v10, %v81_v5  ;;  %v85_v14 = vmin.f32 %v781_v10, %v80_v6  ;;  %s702_s8 = smov 57   ;;  %s704_s21 = smov 127  }
   0xe   :  { %v84_v15 = vmin.f32 %v781_v10, %v79_v9  ;;  %v801_v36 = vstv %s529_s24  ;;  %s705_s22 = smov 65   ;;  %s706_s23 = smov 71  }
   0xf   :  { %v92_v16 = vmul.f32 %v784_v12, %v87_v11  ;;  %v91_v17 = vmul.f32 %v784_v12, %v86_v13  ;;  %v90_v18 = vmul.f32 %v784_v12, %v85_v14  ;;  %v139_v62 = vstv %s842_s14  ;;  %s707_s24 = smov 1   ;;  %s708_s2 = smov 7   ;;  %v545_v13 = vld [vmem:[%s1153_s0 + $0x38] sm:$0xff] }
  0x10   :  { %v89_v22 = vmul.f32 %v784_v12, %v84_v15  ;;  %v142_v7 = vstv %s851_s1  ;;  %s1165_s25 = smov 8   ;;  %s1163_s26 = smov 72   ;;  %v340_v14 = vmax.f32 %v545_v13, 0.0  ;;  %v544_v15 = vld [vmem:[%s1153_s0 + $0x30] sm:$0xff] }
  0x11   :  { %v588_v19 = vand.u32 2147483647, %v92_v16  ;;  %v590_v20 = vcvt.f32.s32 %v92_v16  ;;  %v580_v21 = vand.u32 2147483647, %v91_v17  ;;  %v582_v23 = vcvt.f32.s32 %v91_v17  ;;  %s711_s27 = smov 73   ;;  %s1164_s28 = smov 9  }
  0x12   :  { %v574_v24 = vcvt.f32.s32 %v90_v18  ;;  %v593_v26 = vand.u32 2147483648, %v92_v16  ;;  %v572_v27 = vand.u32 2147483647, %v90_v18  ;;  %v585_v29 = vand.u32 2147483648, %v91_v17  ;;  %s1174_s1 = smov 9  }
  0x13   :  { %v591_v25 = vcvt.s32.f32 %v590_v20  ;;  %v583_v28 = vcvt.s32.f32 %v582_v23  ;;  %v577_v31 = vand.u32 2147483648, %v90_v18  ;;  %vm793_vm0 = vcmp.lt.f32.partialorder %v588_v19, 8388608.0 }
  0x14   :  { %v575_v30 = vcvt.s32.f32 %v574_v24  ;;  %vm797_vm1 = vcmp.lt.f32.partialorder %v580_v21, 8388608.0  ;;  %v566_v35 = vcvt.f32.s32 %v89_v22  ;;  %v564_v39 = vand.u32 2147483647, %v89_v22  ;;  %v543_v21 = vld [vmem:[%s1153_s0 + $0x28] sm:$0xff] }
  0x15   :  { %v592_v33 = vand.u32 2147483647, %v591_v25  ;;  %v584_v37 = vand.u32 2147483647, %v583_v28  ;;  %vm803_vm2 = vcmp.lt.f32.partialorder %v572_v27, 8388608.0  ;;  %v569_v43 = vand.u32 2147483648, %v89_v22 }
  0x16   :  { %v576_v38 = vand.u32 2147483647, %v575_v30  ;;  %v567_v42 = vcvt.s32.f32 %v566_v35  ;;  %vm565_vm4 = vcmp.lt.f32.partialorder %v564_v39, 8388608.0  ;;  %v137_v60 = vstv %s840_s13  ;;  %v542_v28 = vld [vmem:[%s1153_s0 + $0x20] sm:$0xff] }
  0x17   :  { %v594_v40 = vor.u32 %v593_v26, %v592_v33  ;;  %v586_v44 = vor.u32 %v585_v29, %v584_v37  ;;  %v339_v19 = vmax.f32 %v544_v15, 0.0  ;;  %v338_v26 = vmax.f32 %v543_v21, 0.0  ;;  %v920_v37 = vld [vmem:[%s1160_s7 + $0x38] sm:$0xff] }
  0x18   :  { %v578_v45 = vor.u32 %v577_v31, %v576_v38  ;;  %v568_v47 = vand.u32 2147483647, %v567_v42  ;;  %v337_v32 = vmax.f32 %v542_v28, 0.0 }
  0x19   :  { %v595_v46 = vsel %vm793_vm0, %v594_v40, %v92_v16  ;;  %v587_v49 = vsel %vm797_vm1, %v586_v44, %v91_v17  ;;  %v901_v17 = vld [vmem:[%s1160_s7 + $0x40] sm:$0xff]  ;;  %v343_v25 = vmin.f32 %v781_v10, %v339_v19  ;;  %v342_v31 = vmin.f32 %v781_v10, %v338_v26 }
  0x1a   :  { %v101_v48 = vmul.f32 %v595_v46, %v801_v36  ;;  %v579_v50 = vsel %vm803_vm2, %v578_v45, %v90_v18  ;;  %v100_v51 = vmul.f32 %v587_v49, %v801_v36  ;;  %v570_v52 = vor.u32 %v569_v43, %v568_v47  ;;  %v927_v46 = vld [vmem:[%s1160_s7 + $0x30] sm:$0xff] }
  0x1b   :  { %v99_v53 = vmul.f32 %v579_v50, %v801_v36  ;;  %v344_v18 = vmin.f32 %v781_v10, %v340_v14  ;;  %v347_v30 = vmul.f32 %v343_v25, %v784_v12  ;;  %v346_v35 = vmul.f32 %v342_v31, %v784_v12  ;;  %v975_v31 = vld [vmem:[%s1160_s7 + $0x10] sm:$0xff] }
  0x1c   :  { %106 = vst.msk [vmem:[%s1162_s9 + $0x18] sm:$0xff] %vm102_vm3, %v101_v48  ;;  %128 = vmatpush.msra.mxu0 %v101_v48  ;;  %v571_v54 = vsel %vm565_vm4, %v570_v52, %v89_v22  ;;  %v341_v38 = vmin.f32 %v781_v10, %v337_v32  ;;  %vm167_vm0 = vcmask 56320   ;;  %vm159_vm1 = vcmask 64512  }
  0x1d   :  { %105 = vst.msk [vmem:[%s1162_s9 + $0x10] sm:$0xff] %vm102_vm3, %v100_v51  ;;  %v98_v55 = vmul.f32 %v571_v54, %v801_v36  ;;  %v348_v24 = vmul.f32 %v344_v18, %v784_v12  ;;  %v630_v34 = vcvt.f32.s32 %v347_v30  ;;  %v622_v43 = vcvt.f32.s32 %v346_v35  ;;  %v951_v18 = vld [vmem:[%s1160_s7 + $0x20] sm:$0xff] }
  0x1e   :  { %129 = vmatpush.msra.mxu0 %v100_v51  ;;  %104 = vst.msk [vmem:[%s1162_s9 + $0x8] sm:$0xff] %vm102_vm3, %v99_v53  ;;  %v345_v48 = vmul.f32 %v341_v38, %v784_v12  ;;  %v628_v52 = vand.u32 2147483647, %v347_v30  ;;  %vm151_vm2 = vcmask 72704   ;;  %vm223_vm4 = vcmask 588800  }
  0x1f   :  { %103 = vst.msk [vmem:[%s1162_s9] sm:$0xff] %vm102_vm3, %v98_v55  ;;  %v638_v29 = vcvt.f32.s32 %v348_v24  ;;  %v641_v41 = vand.u32 2147483648, %v348_v24  ;;  %v631_v42 = vcvt.s32.f32 %v630_v34  ;;  %v636_v47 = vand.u32 2147483647, %v348_v24  ;;  %v987_v34 = vld [vmem:[%s1160_s7 + $0x8] sm:$0xff] }
  0x20   :  { %130 = vmatpush.msra.mxu0 %v99_v53  ;;  %v633_v53 = vand.u32 2147483648, %v347_v30  ;;  %vm629_vm11 = vcmp.lt.f32.partialorder %v628_v52, 8388608.0  ;;  %v617_v14 = vand.u32 2147483648, %v345_v48 }
  0x21   :  { %v639_v33 = vcvt.s32.f32 %v638_v29  ;;  %v632_v51 = vand.u32 2147483647, %v631_v42  ;;  %vm637_vm10 = vcmp.lt.f32.partialorder %v636_v47, 8388608.0  ;;  %v1001_v47 = vld [vmem:[%s1156_s3] sm:$0xff]  ;;  %s1172_s3 = smov 8  }
  0x22   :  { %131 = vmatpush.msra.mxu0 %v98_v55 }
  0x23   :  { %536 = vmatmul.msk.f32.vlgmr.msra.gmra.mxu0 %vm112_vm5, %v836_v56  ;;  %v640_v40 = vand.u32 2147483647, %v639_v33  ;;  %v634_v12 = vor.u32 %v633_v53, %v632_v51 }
  0x25   :  { %v642_v50 = vor.u32 %v641_v41, %v640_v40  ;;  %v994_v41 = vld [vmem:[%s1160_s7] sm:$0xff] }
  0x7b   :  { %v844_v57 = vpop.permute.xlu0 %109 }
  0xa0   :  { %v133_v58 = vpop.f32.mrf.mxu0 }
  0xa1   :  { %v134_v59 = vadd.f32 %v133_v58, %v844_v57  ;;  %v643_v58 = vsel %vm637_vm10, %v642_v50, %v348_v24 }
  0xa3   :  { %v136_v61 = vmax.f32 %v134_v59, 0.0  ;;  %v623_v59 = vcvt.s32.f32 %v622_v43 }
  0xa5   :  { %v138_v63 = vmin.f32 %v136_v61, %v137_v60  ;;  %v625_v61 = vand.u32 2147483648, %v346_v35 }
  0xa7   :  { %v140_v0 = vmul.f32 %v139_v62, %v138_v63  ;;  %v934_v63 = vmul.f32 %v643_v58, %v801_v36 }
  0xa9   :  { %v598_v1 = vcvt.f32.s32 %v140_v0  ;;  %v596_v3 = vand.u32 2147483647, %v140_v0  ;;  %v601_v5 = vand.u32 2147483648, %v140_v0  ;;  %549 = vst.msk [vmem:[%s1162_s9 + $0x38] sm:$0xff] %vm102_vm3, %v934_v63 }
  0xab   :  { %v599_v2 = vcvt.s32.f32 %v598_v1  ;;  %vm597_vm6 = vcmp.lt.f32.partialorder %v596_v3, 8388608.0  ;;  %v624_v1 = vand.u32 2147483647, %v623_v59  ;;  %v939_v3 = vld [vmem:[%s1160_s7 + $0x28] sm:$0xff] }
  0xad   :  { %v600_v4 = vand.u32 2147483647, %v599_v2  ;;  %v614_v2 = vcvt.f32.s32 %v345_v48 }
  0xaf   :  { %v602_v6 = vor.u32 %v601_v5, %v600_v4  ;;  %v635_v4 = vsel %vm629_vm11, %v634_v12, %v347_v30  ;;  %v612_v5 = vand.u32 2147483647, %v345_v48  ;;  %v615_v13 = vcvt.s32.f32 %v614_v2 }
  0xb1   :  { %v603_v8 = vsel %vm597_vm6, %v602_v6, %v140_v0  ;;  %v620_v0 = vand.u32 2147483647, %v346_v35  ;;  %v616_v21 = vand.u32 2147483647, %v615_v13  ;;  %vm613_vm14 = vcmp.lt.f32.partialorder %v612_v5, 8388608.0 }
  0xb2   :  { %v858_v9 = vmul.f32 %v603_v8, %v142_v7  ;;  %v355_v8 = vmul.f32 %v635_v4, %v801_v36 }
  0xb3   :  { %vm621_vm13 = vcmp.lt.f32.partialorder %v620_v0, 8388608.0  ;;  %v618_v24 = vor.u32 %v617_v14, %v616_v21 }
  0xb4   :  { %196 = vrot.lane.b32.xlu2 %v858_v9, %s697_s15  ;;  %204 = vrot.lane.b32.xlu1 %v858_v9, %s698_s16  ;;  %548 = vst.msk [vmem:[%s1162_s9 + $0x30] sm:$0xff] %vm102_vm3, %v355_v8 }
  0xb5   :  { %201 = vrot.lane.b32.xlu0 %v858_v9, %s699_s17  ;;  %v619_v26 = vsel %vm613_vm14, %v618_v24, %v345_v48 }
  0xb6   :  { %v353_v28 = vmul.f32 %v619_v26, %v801_v36 }
  0xb8   :  { %546 = vst.msk [vmem:[%s1162_s9 + $0x20] sm:$0xff] %vm102_vm3, %v353_v28 }
  0xbc   :  { %185 = vrot.lane.b32.xlu2 %v858_v9, %s700_s18  ;;  %193 = vrot.lane.b32.xlu1 %v858_v9, %s701_s19 }
  0xbd   :  { %188 = vrot.lane.b32.xlu0 %v858_v9, %s702_s8 }
  0xc4   :  { %180 = vrot.lane.b32.xlu2 %v858_v9, %s703_s20  ;;  %177 = vrot.lane.b32.xlu1 %v858_v9, %s704_s21 }
  0xc5   :  { %169 = vrot.lane.b32.xlu0 %v858_v9, %s705_s22 }
  0xcc   :  { %161 = vrot.lane.b32.xlu2 %v858_v9, %s706_s23  ;;  %172 = vrot.lane.b32.xlu1 %v858_v9, %s707_s24 }
  0xcd   :  { %164 = vrot.lane.b32.xlu0 %v858_v9, %s708_s2 }
  0xd4   :  { %156 = vrot.lane.b32.xlu2 %v858_v9, %s1165_s25  ;;  %153 = vrot.lane.b32.xlu1 %v858_v9, %s1163_s26 }
  0xd5   :  { %145 = vrot.lane.b32.xlu0 %v858_v9, %s711_s27 }
  0xdc   :  { %148 = vrot.lane.b32.xlu1 %v858_v9, %s1164_s28 }
 0x10e   :  { %v197_v11 = vpop.permute.xlu2 %196 }
 0x116   :  { %v186_v22 = vpop.permute.xlu2 %185 }
 0x11e   :  { %v181_v54 = vpop.permute.xlu2 %180 }
 0x126   :  { %v205_v16 = vpop.permute.xlu1 %204  ;;  %v162_v25 = vpop.permute.xlu2 %161 }
 0x127   :  { %v202_v20 = vpop.permute.xlu0 %201 }
 0x128   :  { %v208_v23 = vsel %vm207_vm7, %v202_v20, %v205_v16 }
 0x129   :  { %v217_v27 = vmul.f32 %v208_v23, %v901_v17  ;;  %v213_v23 = vmul.f32 %v858_v9, %v951_v18 }
 0x12b   :  { %234 = vmatpush.msra.mxu1 %v217_v27  ;;  %v968_v27 = vld [vmem:[%s1160_s7 + $0x18] sm:$0xff]  ;;  %s1173_s7 = smov 72  }
 0x12e   :  { %v194_v39 = vpop.permute.xlu1 %193 }
 0x12f   :  { %v200_v44 = vsel %vm199_vm8, %v194_v39, %v197_v11  ;;  %v189_v45 = vpop.permute.xlu0 %188  ;;  %v626_v11 = vor.u32 %v625_v61, %v624_v1 }
 0x130   :  { %v192_v49 = vsel %vm191_vm9, %v186_v22, %v189_v45  ;;  %v216_v10 = vmul.f32 %v200_v44, %v920_v37 }
 0x131   :  { %v215_v55 = vmul.f32 %v192_v49, %v927_v46  ;;  %v627_v20 = vsel %vm621_vm13, %v626_v11, %v346_v35  ;;  %v157_v35 = vpop.permute.xlu2 %156 }
 0x132   :  { %235 = vmatpush.msra.mxu1 %v216_v10  ;;  %v354_v22 = vmul.f32 %v627_v20, %v801_v36 }
 0x134   :  { %236 = vmatpush.msra.mxu1 %v215_v55  ;;  %547 = vst.msk [vmem:[%s1162_s9 + $0x28] sm:$0xff] %vm102_vm3, %v354_v22 }
 0x136   :  { %v178_v6 = vpop.permute.xlu1 %177 }
 0x137   :  { %v184_v15 = vsel %vm183_vm12, %v178_v6, %v181_v54  ;;  %v170_v16 = vpop.permute.xlu0 %169 }
 0x138   :  { %v214_v19 = vmul.f32 %v184_v15, %v939_v3 }
 0x13a   :  { %237 = vmatpush.msra.mxu1 %v214_v19 }
 0x13c   :  { %238 = vmatpush.msra.mxu1 %v213_v23 }
 0x13e   :  { %v173_v29 = vpop.permute.xlu1 %172 }
 0x13f   :  { %v176_v9 = vsel %vm175_vm15, %v170_v16, %v173_v29  ;;  %v165_v30 = vpop.permute.xlu0 %164 }
 0x140   :  { %v168_v32 = vsel %vm167_vm0, %v162_v25, %v165_v30  ;;  %v212_v33 = vmul.f32 %v176_v9, %v968_v27 }
 0x141   :  { %v211_v36 = vmul.f32 %v168_v32, %v975_v31 }
 0x142   :  { %239 = vmatpush.msra.mxu1 %v212_v33 }
 0x144   :  { %240 = vmatpush.msra.mxu1 %v211_v36 }
 0x146   :  { %v154_v38 = vpop.permute.xlu1 %153 }
 0x147   :  { %v160_v39 = vsel %vm159_vm1, %v154_v38, %v157_v35  ;;  %v146_v42 = vpop.permute.xlu0 %145 }
 0x148   :  { %v210_v40 = vmul.f32 %v160_v39, %v987_v34 }
 0x14a   :  { %241 = vmatpush.msra.mxu1 %v210_v40 }
 0x14e   :  { %v149_v43 = vpop.permute.xlu1 %148 }
 0x14f   :  { %v152_v44 = vsel %vm151_vm2, %v146_v42, %v149_v43 }
 0x150   :  { %v209_v45 = vmul.f32 %v152_v44, %v994_v41 }
 0x152   :  { %242 = vmatpush.msra.mxu1 %v209_v45 }
 0x153   :  { %537 = vmatmul.msk.f32.vlgmr.msra.gmra.mxu1 %vm223_vm4, %v1001_v47 }
 0x154   :  { %374 = vmatpush.msrb.mxu1 %v934_v63 }
 0x156   :  { %375 = vmatpush.msrb.mxu1 %v355_v8 }
 0x158   :  { %376 = vmatpush.msrb.mxu1 %v354_v22 }
 0x15a   :  { %377 = vmatpush.msrb.mxu1 %v353_v28 }
 0x15b   :  { %550 = vmatmul.msk.f32.vlgmr.msrb.gmra.mxu1 %vm112_vm5, %v836_v56 }
 0x1d0   :  { %v1008_v48 = vpop.f32.mrf.mxu1 }
 0x1d8   :  { %v379_v49 = vpop.f32.mrf.mxu1 }
 0x1d9   :  { %v380_v10 = vadd.f32 %v379_v49, %v844_v57  ;;  %v57_v57 = vld [vmem:[%s1157_s4] sm:$0xff]  ;;  %s1055_s4 = sld [smem:[#allocation2 + $0x6]] }
 0x1db   :  { %v382_v50 = vmax.f32 %v380_v10, 0.0  ;;  %v59_v10 = vld [vmem:[%s1158_s5 + $0x8] sm:$0xff] }
 0x1dd   :  { %v383_v51 = vmin.f32 %v382_v50, %v137_v60  ;;  %v64_v60 = vld [vmem:[%s1159_s6 + $0x10] sm:$0xff] }
 0x1de   :  { %v60_v50 = vld [vmem:[%s1158_s5 + $0x10] sm:$0xff] }
 0x1df   :  { %v384_v52 = vmul.f32 %v383_v51, %v139_v62  ;;  %v248_v33 = vstv %s1055_s4 }
 0x1e1   :  { %v646_v53 = vcvt.f32.s32 %v384_v52  ;;  %v644_v55 = vand.u32 2147483647, %v384_v52  ;;  %v649_v59 = vand.u32 2147483648, %v384_v52 }
 0x1e3   :  { %v647_v54 = vcvt.s32.f32 %v646_v53  ;;  %vm645_vm6 = vcmp.lt.f32.partialorder %v644_v55, 8388608.0 }
 0x1e5   :  { %v648_v58 = vand.u32 2147483647, %v647_v54  ;;  %v61_v54 = vld [vmem:[%s1158_s5 + $0x18] sm:$0xff] }
 0x1e7   :  { %v650_v61 = vor.u32 %v649_v59, %v648_v58  ;;  %v62_v58 = vld [vmem:[%s1159_s6] sm:$0xff] }
 0x1e9   :  { %v651_v63 = vsel %vm645_vm6, %v650_v61, %v384_v52 }
 0x1ea   :  { %v386_v56 = vmul.f32 %v651_v63, %v142_v7 }
 0x1ec   :  { %430 = vrot.lane.b32.xlu1 %v386_v56, %s701_s19  ;;  %440 = vrot.lane.b32.xlu0 %v386_v56, %s698_s16 }
 0x1ed   :  { %437 = vrot.lane.b32.xlu2 %v386_v56, %s699_s17  ;;  %s1058_s17 = sld [smem:[#allocation2 + $0x7]] }
 0x1f3   :  { %v250_v35 = vstv %s1058_s17 }
 0x1f4   :  { %426 = vrot.lane.b32.xlu1 %v386_v56, %s702_s8  ;;  %423 = vrot.lane.b32.xlu0 %v386_v56, %s700_s18  ;;  %s1065_s18 = sld [smem:[#allocation2 + $0x8]] }
 0x1f5   :  { %433 = vrot.lane.b32.xlu2 %v386_v56, %s697_s15 }
 0x1fa   :  { %v253_v45 = vstv %s1065_s18 }
 0x1fc   :  { %409 = vrot.lane.b32.xlu1 %v386_v56, %s705_s22  ;;  %419 = vrot.lane.b32.xlu0 %v386_v56, %s703_s20 }
 0x1fd   :  { %416 = vrot.lane.b32.xlu2 %v386_v56, %s704_s21 }
 0x204   :  { %405 = vrot.lane.b32.xlu1 %v386_v56, %s708_s2  ;;  %402 = vrot.lane.b32.xlu0 %v386_v56, %s706_s23 }
 0x205   :  { %412 = vrot.lane.b32.xlu2 %v386_v56, %s707_s24 }
 0x20c   :  { %388 = vrot.lane.b32.xlu1 %v386_v56, %s711_s27  ;;  %398 = vrot.lane.b32.xlu0 %v386_v56, %s1172_s3 }
 0x20d   :  { %395 = vrot.lane.b32.xlu2 %v386_v56, %s1173_s7 }
 0x214   :  { %220 = vperm.xlu0 %678, %v57_v57   ;;  %257 = vperm.xlu1 %679, %v62_v58  }
 0x215   :  { %391 = vrot.lane.b32.xlu2 %v386_v56, %s1174_s1 }
 0x21c   :  { %267 = vperm.xlu0 %678, %v64_v60  }
 0x247   :  { %v438_v62 = vpop.permute.xlu2 %437 }
 0x24f   :  { %v434_v7 = vpop.permute.xlu2 %433 }
 0x257   :  { %v417_v1 = vpop.permute.xlu2 %416 }
 0x25e   :  { %v431_v12 = vpop.permute.xlu1 %430  ;;  %v441_v0 = vpop.permute.xlu0 %440 }
 0x25f   :  { %v436_v2 = vsel %vm199_vm8, %v431_v12, %v434_v7  ;;  %v443_v4 = vsel %vm207_vm7, %v438_v62, %v441_v0  ;;  %v413_v15 = vpop.permute.xlu2 %412  ;;  %v65_v0 = vld [vmem:[%s1159_s6 + $0x18] sm:$0xff] }
 0x260   :  { %v452_v5 = vmul.f32 %v443_v4, %v901_v17  ;;  %v451_v6 = vmul.f32 %v436_v2, %v920_v37  ;;  %v448_v37 = vmul.f32 %v386_v56, %v951_v18  ;;  %272 = vperm.xlu1 %679, %v65_v0  }
 0x262   :  { %460 = vmatpush.msrb.mxu0 %v452_v5 }
 0x264   :  { %461 = vmatpush.msrb.mxu0 %v451_v6 }
 0x266   :  { %v427_v8 = vpop.permute.xlu1 %426  ;;  %v424_v11 = vpop.permute.xlu0 %423 }
 0x267   :  { %v429_v13 = vsel %vm191_vm9, %v424_v11, %v427_v8  ;;  %v396_v22 = vpop.permute.xlu2 %395  ;;  %v318_v8 = vld [vmem:[%s1162_s9 + $0x10] sm:$0xff] }
 0x268   :  { %v450_v14 = vmul.f32 %v429_v13, %v927_v46 }
 0x26a   :  { %462 = vmatpush.msrb.mxu0 %v450_v14 }
 0x26e   :  { %v410_v16 = vpop.permute.xlu1 %409  ;;  %v420_v19 = vpop.permute.xlu0 %419 }
 0x26f   :  { %v422_v20 = vsel %vm183_vm12, %v417_v1, %v420_v19  ;;  %v415_v17 = vsel %vm175_vm15, %v410_v16, %v413_v15  ;;  %v392_v28 = vpop.permute.xlu2 %391  ;;  %v63_v1 = vld [vmem:[%s1159_s6 + $0x8] sm:$0xff]  ;;  %v316_v16 = vld [vmem:[%s1162_s9] sm:$0xff] }
 0x270   :  { %v449_v21 = vmul.f32 %v422_v20, %v939_v3  ;;  %v447_v23 = vmul.f32 %v415_v17, %v968_v27  ;;  %262 = vperm.xlu2 %680, %v63_v1   ;;  %v317_v17 = vld [vmem:[%s1162_s9 + $0x8] sm:$0xff] }
 0x272   :  { %463 = vmatpush.msrb.mxu0 %v449_v21 }
 0x274   :  { %464 = vmatpush.msrb.mxu0 %v448_v37 }
 0x276   :  { %v406_v24 = vpop.permute.xlu1 %405  ;;  %v403_v25 = vpop.permute.xlu0 %402  ;;  %465 = vmatpush.msrb.mxu0 %v447_v23 }
 0x277   :  { %v408_v46 = vsel %vm167_vm0, %v403_v25, %v406_v24 }
 0x278   :  { %v446_v26 = vmul.f32 %v408_v46, %v975_v31 }
 0x27a   :  { %466 = vmatpush.msrb.mxu0 %v446_v26  ;;  %v319_v26 = vld [vmem:[%s1162_s9 + $0x18] sm:$0xff] }
 0x27e   :  { %v389_v29 = vpop.permute.xlu1 %388  ;;  %v399_v3 = vpop.permute.xlu0 %398 }
 0x27f   :  { %v394_v9 = vsel %vm151_vm2, %v389_v29, %v392_v28  ;;  %v401_v30 = vsel %vm159_vm1, %v396_v22, %v399_v3 }
 0x280   :  { %v445_v18 = vmul.f32 %v401_v30, %v987_v34  ;;  %v444_v27 = vmul.f32 %v394_v9, %v994_v41  ;;  %v556_v30 = vld [vmem:[%s1162_s9 + $0x20] sm:$0xff] }
 0x282   :  { %467 = vmatpush.msrb.mxu0 %v445_v18 }
 0x284   :  { %468 = vmatpush.msrb.mxu0 %v444_v27 }
 0x285   :  { %551 = vmatmul.msk.f32.vlgmr.msrb.gmra.mxu0 %vm223_vm4, %v1001_v47 }
 0x286   :  { %v221_v31 = vpop.permute.xlu0 %220  ;;  %v258_v15 = vpop.permute.xlu1 %257 }
 0x287   :  { %v245_v32 = vadd.f32 %v1008_v48, %v221_v31  ;;  %v58_v48 = vld [vmem:[%s1158_s5] sm:$0xff] }
 0x289   :  { %v247_v36 = vmax.f32 %v245_v32, 0.0 }
 0x28b   :  { %v249_v34 = vmin.f32 %v247_v36, %v248_v33 }
 0x28d   :  { %v251_v38 = vmul.f32 %v250_v35, %v249_v34 }
 0x28e   :  { %v268_v5 = vpop.permute.xlu0 %267 }
 0x28f   :  { %v606_v39 = vcvt.f32.s32 %v251_v38  ;;  %v604_v41 = vand.u32 2147483647, %v251_v38  ;;  %v609_v43 = vand.u32 2147483648, %v251_v38 }
 0x291   :  { %v607_v40 = vcvt.s32.f32 %v606_v39  ;;  %vm605_vm5 = vcmp.lt.f32.partialorder %v604_v41, 8388608.0  ;;  %v558_v39 = vld [vmem:[%s1162_s9 + $0x30] sm:$0xff] }
 0x293   :  { %v608_v42 = vand.u32 2147483647, %v607_v40 }
 0x295   :  { %v610_v44 = vor.u32 %v609_v43, %v608_v42 }
 0x297   :  { %v611_v47 = vsel %vm605_vm5, %v610_v44, %v251_v38  ;;  %v559_v44 = vld [vmem:[%s1162_s9 + $0x38] sm:$0xff] }
 0x298   :  { %v254_v49 = vmul.f32 %v611_v47, %v253_v45 }
 0x29a   :  { %302 = vmatpush.msra.mxu2 %v254_v49 }
 0x29b   :  { %538 = vmatmul.msk.f32.vlgmr.msra.gmra.mxu2 %vm159_vm1, %v58_v48 }
 0x2a3   :  { %539 = vmatmul.msk.f32.gmra.mxu2 %vm159_vm1, %v59_v10 }
 0x2ab   :  { %540 = vmatmul.msk.f32.gmra.mxu2 %vm159_vm1, %v60_v50 }
 0x2b3   :  { %541 = vmatmul.msk.f32.gmra.mxu2 %vm159_vm1, %v61_v54 }
 0x2ca   :  { %v263_v37 = vpop.permute.xlu2 %262 }
 0x2d2   :  { %v273_v25 = vpop.permute.xlu1 %272 }
 0x302   :  { %v470_v51 = vpop.f32.mrf.mxu0 }
 0x303   :  { %v471_v52 = vadd.f32 %v470_v51, %v221_v31 }
 0x305   :  { %v473_v53 = vmax.f32 %v471_v52, 0.0 }
 0x307   :  { %v474_v55 = vmin.f32 %v473_v53, %v248_v33  ;;  %v557_v33 = vld [vmem:[%s1162_s9 + $0x28] sm:$0xff] }
 0x309   :  { %v475_v59 = vmul.f32 %v474_v55, %v250_v35 }
 0x30b   :  { %v654_v61 = vcvt.f32.s32 %v475_v59  ;;  %v652_v56 = vand.u32 2147483647, %v475_v59  ;;  %v657_v60 = vand.u32 2147483648, %v475_v59 }
 0x30d   :  { %v655_v63 = vcvt.s32.f32 %v654_v61  ;;  %vm653_vm7 = vcmp.lt.f32.partialorder %v652_v56, 8388608.0 }
 0x30f   :  { %v656_v57 = vand.u32 2147483647, %v655_v63 }
 0x311   :  { %v658_v62 = vor.u32 %v657_v60, %v656_v57 }
 0x313   :  { %v659_v7 = vsel %vm653_vm7, %v658_v62, %v475_v59 }
 0x314   :  { %v477_v12 = vmul.f32 %v659_v7, %v253_v45 }
 0x316   :  { %493 = vmatpush.msra.mxu3 %v477_v12 }
 0x317   :  { %552 = vmatmul.msk.f32.vlgmr.msra.gmra.mxu3 %vm159_vm1, %v58_v48 }
 0x31e   :  { %v304_v2 = vpop.f32.mrf.mxu2 }
 0x31f   :  { %553 = vmatmul.msk.f32.gmra.mxu3 %vm159_vm1, %v59_v10  ;;  %v305_v19 = vadd.f32 %v304_v2, %v258_v15 }
 0x321   :  { %v320_v20 = vadd.f32 %v316_v16, %v305_v19 }
 0x323   :  { %v324_v21 = vmax.f32 %v320_v20, 0.0 }
 0x325   :  { %328 = vst.msk [vmem:[%s1162_s9] sm:$0xff] %vm102_vm3, %v324_v21 }
 0x326   :  { %v307_v4 = vpop.f32.mrf.mxu2 }
 0x327   :  { %554 = vmatmul.msk.f32.gmra.mxu3 %vm159_vm1, %v60_v50  ;;  %v308_v22 = vadd.f32 %v307_v4, %v263_v37 }
 0x329   :  { %v321_v23 = vadd.f32 %v317_v17, %v308_v22 }
 0x32b   :  { %v325_v24 = vmax.f32 %v321_v23, 0.0 }
 0x32d   :  { %329 = vst.msk [vmem:[%s1162_s9 + $0x8] sm:$0xff] %vm102_vm3, %v325_v24 }
 0x32e   :  { %v310_v6 = vpop.f32.mrf.mxu2 }
 0x32f   :  { %v311_v11 = vadd.f32 %v310_v6, %v268_v5  ;;  %555 = vmatmul.msk.f32.gmra.mxu3 %vm159_vm1, %v61_v54 }
 0x331   :  { %v322_v13 = vadd.f32 %v318_v8, %v311_v11 }
 0x333   :  { %v326_v14 = vmax.f32 %v322_v13, 0.0 }
 0x335   :  { %330 = vst.msk [vmem:[%s1162_s9 + $0x10] sm:$0xff] %vm102_vm3, %v326_v14 }
 0x336   :  { %v313_v46 = vpop.f32.mrf.mxu2 }
 0x337   :  { %v314_v28 = vadd.f32 %v313_v46, %v273_v25 }
 0x339   :  { %v323_v29 = vadd.f32 %v319_v26, %v314_v28 }
 0x33b   :  { %v327_v3 = vmax.f32 %v323_v29, 0.0 }
 0x33d   :  { %331 = vst.msk [vmem:[%s1162_s9 + $0x18] sm:$0xff] %vm102_vm3, %v327_v3 }
 0x39a   :  { %v495_v9 = vpop.f32.mrf.mxu3 }
 0x39b   :  { %v496_v18 = vadd.f32 %v495_v9, %v258_v15 }
 0x39d   :  { %v511_v27 = vadd.f32 %v556_v30, %v496_v18 }
 0x39f   :  { %v515_v31 = vmax.f32 %v511_v27, 0.0 }
 0x3a1   :  { %560 = vst.msk [vmem:[%s1162_s9 + $0x20] sm:$0xff] %vm102_vm3, %v515_v31 }
 0x3a2   :  { %v498_v32 = vpop.f32.mrf.mxu3 }
 0x3a3   :  { %v499_v36 = vadd.f32 %v498_v32, %v263_v37 }
 0x3a5   :  { %v512_v35 = vadd.f32 %v557_v33, %v499_v36 }
 0x3a7   :  { %v516_v34 = vmax.f32 %v512_v35, 0.0 }
 0x3a9   :  { %561 = vst.msk [vmem:[%s1162_s9 + $0x28] sm:$0xff] %vm102_vm3, %v516_v34 }
 0x3aa   :  { %v501_v38 = vpop.f32.mrf.mxu3 }
 0x3ab   :  { %v502_v40 = vadd.f32 %v501_v38, %v268_v5 }
 0x3ad   :  { %v513_v41 = vadd.f32 %v558_v39, %v502_v40 }
 0x3af   :  { %v517_v42 = vmax.f32 %v513_v41, 0.0 }
 0x3b1   :  { %562 = vst.msk [vmem:[%s1162_s9 + $0x30] sm:$0xff] %vm102_vm3, %v517_v42 }
 0x3b2   :  { %v504_v43 = vpop.f32.mrf.mxu3 }
 0x3b3   :  { %v505_v45 = vadd.f32 %v504_v43, %v273_v25 }
 0x3b5   :  { %v514_v47 = vadd.f32 %v559_v44, %v505_v45 }
 0x3b7   :  { %v518_v49 = vmax.f32 %v514_v47, 0.0 }
 0x3b9   :  { %563 = vst.msk [vmem:[%s1162_s9 + $0x38] sm:$0xff] %vm102_vm3, %v518_v49 }
 0x3ba   :  { %527 = vsyncpa [#allocation3], 1 }

</bundles_post_ra>
